<compile_context>
chip_gen: v7x
topology: tpu7x:2x2x1
jax: 0.10.0
libtpu: 0.0.40
codegen_flags: <defaults>
</compile_context>

<pallas_src>
import functools

import jax
import jax.numpy as jnp
from jax.experimental import pallas as pl
from jax.experimental.pallas import tpu as pltpu

BN_EPS = 1e-5


# ----------------------------------------------------------------------------
# Kernel
# ----------------------------------------------------------------------------
def _bn_relu(h, gamma, beta):
    """Training-mode BatchNorm1d (biased variance) + ReLU.

    Centered two-pass statistics in f32 (safe against cancellation), then the
    normalization itself is only mul+add per element:
        out = (h - mean) * (rsqrt(var + eps) * gamma) + beta
    h: [B, F] f32; gamma/beta: [1, F] f32.
    """
    mean = jnp.mean(h, axis=0, keepdims=True)
    centered = h - mean
    var = jnp.mean(centered * centered, axis=0, keepdims=True)
    scale = jax.lax.rsqrt(var + BN_EPS) * gamma          # [1, F]
    return jnp.maximum(centered * scale + beta, 0.0)


def _mlp_kernel(
    x_ref,
    w1_ref, g1_ref, be1_ref,
    w2_ref, g2_ref, be2_ref,
    w3_ref, b3_ref,
    o_ref,
    *,
    compute_dtype,
):
    # fc1 (bias cancelled by bn1) -> bn1 -> relu
    x = x_ref[...].astype(compute_dtype)
    h1 = jnp.dot(x, w1_ref[...], preferred_element_type=jnp.float32)
    h1 = _bn_relu(h1, g1_ref[...], be1_ref[...])

    # fc2 (bias cancelled by bn2) -> bn2 -> relu
    h2 = jnp.dot(h1.astype(compute_dtype), w2_ref[...],
                 preferred_element_type=jnp.float32)
    h2 = _bn_relu(h2, g2_ref[...], be2_ref[...])

    # fc3 (bias kept — no BN after it)
    out = jnp.dot(h2.astype(compute_dtype), w3_ref[...],
                  preferred_element_type=jnp.float32) + b3_ref[...]
    o_ref[...] = out.astype(o_ref.dtype)


# ----------------------------------------------------------------------------
# One-time parameter preparation (hoisted out of the per-call wrapper)
# ----------------------------------------------------------------------------
def prepare_params(params, compute_dtype=jnp.bfloat16):
    """Cast matmul weights once; drop b1/b2 (cancelled by training-mode BN)."""
    (w1, _b1, g1, be1, w2, _b2, g2, be2, w3, b3) = params
    return (
        w1.astype(compute_dtype), g1, be1,
        w2.astype(compute_dtype), g2, be2,
        w3.astype(compute_dtype), b3,
    )


# ----------------------------------------------------------------------------
# Wrapper
# ----------------------------------------------------------------------------
def _vmem_limit_bytes(B, in_dim, hidden, h2dim, out_dim, weight_bytes):
    # f32 activations (+ bf16 matmul-operand copies), plus weights, x2 headroom.
    per_row = 4 * (in_dim + hidden + h2dim + out_dim) + 2 * (in_dim + hidden + h2dim)
    est = 2 * (weight_bytes + B * per_row) + (2 << 20)
    return int(min(max(est, 32 << 20), 100 << 20))


def nba_model_forward(x, prepared):
    """Forward pass.  x: [B, in_dim] f32; `prepared` from prepare_params()."""
    (w1, g1, be1, w2, g2, be2, w3, b3) = prepared
    B, in_dim = x.shape
    hidden = w1.shape[1]
    h2dim = w2.shape[1]
    out_dim = w3.shape[1]
    compute_dtype = w1.dtype

    weight_bytes = (w1.size * w1.dtype.itemsize
                    + w2.size * w2.dtype.itemsize
                    + w3.size * w3.dtype.itemsize)

    vmem = pl.BlockSpec(memory_space=pltpu.MemorySpace.VMEM)
    args = (x, w1, g1, be1, w2, g2, be2, w3, b3)

    return pl.pallas_call(
        functools.partial(_mlp_kernel, compute_dtype=compute_dtype),
        out_shape=jax.ShapeDtypeStruct((B, out_dim), jnp.float32),
        in_specs=[vmem] * len(args),
        out_specs=vmem,
        compiler_params=pltpu.CompilerParams(
            vmem_limit_bytes=_vmem_limit_bytes(
                B, in_dim, hidden, h2dim, out_dim, weight_bytes)),
    )(*args)


# ----------------------------------------------------------------------------
# Params + pure-JAX reference (PyTorch semantics: biases kept, f32, two-pass BN)
# ----------------------------------------------------------------------------
def init_params(key, input_size=63, hidden_size=512, output_size=50):
    ks = jax.random.split(key, 8)
    h2 = hidden_size // 2

    def lin(k, fan_in, fan_out):
        bound = 1.0 / jnp.sqrt(fan_in)
        kw, kb = jax.random.split(k)
        w = jax.random.uniform(kw, (fan_in, fan_out), jnp.float32, -bound, bound)
        b = jax.random.uniform(kb, (1, fan_out), jnp.float32, -bound, bound)
        return w, b

    w1, b1 = lin(ks[0], input_size, hidden_size)
    w2, b2 = lin(ks[1], hidden_size, h2)
    w3, b3 = lin(ks[2], h2, output_size)

    g1 = 1.0 + 0.1 * jax.random.normal(ks[3], (1, hidden_size), jnp.float32)
    be1 = 0.1 * jax.random.normal(ks[4], (1, hidden_size), jnp.float32)
    g2 = 1.0 + 0.1 * jax.random.normal(ks[5], (1, h2), jnp.float32)
    be2 = 0.1 * jax.random.normal(ks[6], (1, h2), jnp.float32)

    return (w1, b1, g1, be1, w2, b2, g2, be2, w3, b3)


def _bn_ref(h, gamma, beta):
    mean = jnp.mean(h, axis=0, keepdims=True)
    var = jnp.mean((h - mean) ** 2, axis=0, keepdims=True)
    return (h - mean) * jax.lax.rsqrt(var + BN_EPS) * gamma + beta


def reference_forward(x, params):
    (w1, b1, g1, be1, w2, b2, g2, be2, w3, b3) = params
    h1 = jnp.maximum(_bn_ref(x @ w1 + b1, g1, be1), 0.0)
    h2 = jnp.maximum(_bn_ref(h1 @ w2 + b2, g2, be2), 0.0)
    return h2 @ w3 + b3


# ----------------------------------------------------------------------------
# Self-test
# ----------------------------------------------------------------------------
if __name__ == "__main__":
    # Small config consistent with the module: input=63, output=50, hidden=256
    # (h2=128), batch=128.
    B, IN, HID, OUT = 128, 63, 256, 50
    key = jax.random.PRNGKey(0)
    kx, kp = jax.random.split(key)

    x = jax.random.normal(kx, (B, IN), jnp.float32)
    params = init_params(kp, input_size=IN, hidden_size=HID, output_size=OUT)
    ref = jax.block_until_ready(reference_forward(x, params))

    # f32 MXU path: must match the (bias-carrying) reference tightly, which
    # also verifies that dropping b1/b2 is exact under training-mode BN.
    out_f32 = jax.block_until_ready(
        nba_model_forward(x, prepare_params(params, jnp.float32)))
    assert out_f32.shape == (B, OUT), out_f32.shape
    assert jnp.allclose(out_f32, ref, atol=1e-3, rtol=1e-3), \
        "f32 kernel mismatch vs JAX reference"

    # Default bf16 MXU-operand path (BN stats in f32): looser tolerance.
    out_bf16 = jax.block_until_ready(
        nba_model_forward(x, prepare_params(params)))
    assert out_bf16.shape == (B, OUT), out_bf16.shape
    assert jnp.allclose(out_bf16, ref, atol=5e-2, rtol=5e-2), \
        "bf16 kernel mismatch vs JAX reference"

    print("KERNEL_OK")
</pallas_src>

<mosaic_0001>
module attributes {stable_mosaic.version = 11 : i64} {
  func.func @_mlp_kernel(%arg0: memref<128x63xf32, #tpu.memory_space<vmem>>, %arg1: memref<63x256xf32, #tpu.memory_space<vmem>>, %arg2: memref<1x256xf32, #tpu.memory_space<vmem>>, %arg3: memref<1x256xf32, #tpu.memory_space<vmem>>, %arg4: memref<256x128xf32, #tpu.memory_space<vmem>>, %arg5: memref<1x128xf32, #tpu.memory_space<vmem>>, %arg6: memref<1x128xf32, #tpu.memory_space<vmem>>, %arg7: memref<128x50xf32, #tpu.memory_space<vmem>>, %arg8: memref<1x50xf32, #tpu.memory_space<vmem>>, %arg9: memref<128x50xf32, #tpu.memory_space<vmem>>) attributes {dimension_semantics = [], scalar_prefetch = 0 : i64, scratch_operands = 0 : i64, tpu.core_type = #tpu.core_type<tc>} {
    %c0 = arith.constant 0 : index
    %c0_0 = arith.constant 0 : index
    %0 = vector.load %arg0[%c0, %c0_0] : memref<128x63xf32, #tpu.memory_space<vmem>>, vector<128x63xf32>
    %c0_1 = arith.constant 0 : index
    %c0_2 = arith.constant 0 : index
    %1 = vector.load %arg1[%c0_1, %c0_2] : memref<63x256xf32, #tpu.memory_space<vmem>>, vector<63x256xf32>
    %cst = arith.constant dense<0.000000e+00> : vector<128x256xf32>
    %2 = tpu.matmul %0, %1, %cst {dimension_numbers = #tpu.dot_dimension_numbers<[1], [0], [0], [1], [0, 0, 1, 1], [], []>} : vector<128x63xf32>, vector<63x256xf32>, vector<128x256xf32> -> vector<128x256xf32>
    %c0_3 = arith.constant 0 : index
    %c0_4 = arith.constant 0 : index
    %3 = vector.load %arg2[%c0_3, %c0_4] : memref<1x256xf32, #tpu.memory_space<vmem>>, vector<1x256xf32>
    %c0_5 = arith.constant 0 : index
    %c0_6 = arith.constant 0 : index
    %4 = vector.load %arg3[%c0_5, %c0_6] : memref<1x256xf32, #tpu.memory_space<vmem>>, vector<1x256xf32>
    %cst_7 = arith.constant dense<0.000000e+00> : vector<256xf32>
    %5 = vector.multi_reduction <add>, %2, %cst_7 [0] : vector<128x256xf32> to vector<256xf32>
    %6 = vector.shape_cast %5 : vector<256xf32> to vector<1x256xf32>
    %cst_8 = arith.constant 1.280000e+02 : f32
    %7 = vector.broadcast %cst_8 : f32 to vector<1x256xf32>
    %8 = arith.divf %6, %7 : vector<1x256xf32>
    %9 = vector.broadcast %8 : vector<1x256xf32> to vector<128x256xf32>
    %10 = arith.subf %2, %9 : vector<128x256xf32>
    %11 = arith.mulf %10, %10 : vector<128x256xf32>
    %cst_9 = arith.constant dense<0.000000e+00> : vector<256xf32>
    %12 = vector.multi_reduction <add>, %11, %cst_9 [0] : vector<128x256xf32> to vector<256xf32>
    %13 = vector.shape_cast %12 : vector<256xf32> to vector<1x256xf32>
    %cst_10 = arith.constant 1.280000e+02 : f32
    %14 = vector.broadcast %cst_10 : f32 to vector<1x256xf32>
    %15 = arith.divf %13, %14 : vector<1x256xf32>
    %cst_11 = arith.constant 9.99999974E-6 : f32
    %16 = vector.broadcast %cst_11 : f32 to vector<1x256xf32>
    %17 = arith.addf %15, %16 : vector<1x256xf32>
    %18 = math.rsqrt %17 : vector<1x256xf32>
    %19 = arith.mulf %18, %3 : vector<1x256xf32>
    %20 = vector.broadcast %19 : vector<1x256xf32> to vector<128x256xf32>
    %21 = arith.mulf %10, %20 : vector<128x256xf32>
    %22 = vector.broadcast %4 : vector<1x256xf32> to vector<128x256xf32>
    %23 = arith.addf %21, %22 : vector<128x256xf32>
    %cst_12 = arith.constant 0.000000e+00 : f32
    %24 = vector.broadcast %cst_12 : f32 to vector<128x256xf32>
    %25 = arith.maximumf %23, %24 : vector<128x256xf32>
    %c0_13 = arith.constant 0 : index
    %c0_14 = arith.constant 0 : index
    %26 = vector.load %arg4[%c0_13, %c0_14] : memref<256x128xf32, #tpu.memory_space<vmem>>, vector<256x128xf32>
    %cst_15 = arith.constant dense<0.000000e+00> : vector<128x128xf32>
    %27 = tpu.matmul %25, %26, %cst_15 {dimension_numbers = #tpu.dot_dimension_numbers<[1], [0], [0], [1], [0, 0, 1, 1], [], []>} : vector<128x256xf32>, vector<256x128xf32>, vector<128x128xf32> -> vector<128x128xf32>
    %c0_16 = arith.constant 0 : index
    %c0_17 = arith.constant 0 : index
    %28 = vector.load %arg5[%c0_16, %c0_17] : memref<1x128xf32, #tpu.memory_space<vmem>>, vector<1x128xf32>
    %c0_18 = arith.constant 0 : index
    %c0_19 = arith.constant 0 : index
    %29 = vector.load %arg6[%c0_18, %c0_19] : memref<1x128xf32, #tpu.memory_space<vmem>>, vector<1x128xf32>
    %cst_20 = arith.constant dense<0.000000e+00> : vector<128xf32>
    %30 = vector.multi_reduction <add>, %27, %cst_20 [0] : vector<128x128xf32> to vector<128xf32>
    %31 = vector.shape_cast %30 : vector<128xf32> to vector<1x128xf32>
    %cst_21 = arith.constant 1.280000e+02 : f32
    %32 = vector.broadcast %cst_21 : f32 to vector<1x128xf32>
    %33 = arith.divf %31, %32 : vector<1x128xf32>
    %34 = vector.broadcast %33 : vector<1x128xf32> to vector<128x128xf32>
    %35 = arith.subf %27, %34 : vector<128x128xf32>
    %36 = arith.mulf %35, %35 : vector<128x128xf32>
    %cst_22 = arith.constant dense<0.000000e+00> : vector<128xf32>
    %37 = vector.multi_reduction <add>, %36, %cst_22 [0] : vector<128x128xf32> to vector<128xf32>
    %38 = vector.shape_cast %37 : vector<128xf32> to vector<1x128xf32>
    %cst_23 = arith.constant 1.280000e+02 : f32
    %39 = vector.broadcast %cst_23 : f32 to vector<1x128xf32>
    %40 = arith.divf %38, %39 : vector<1x128xf32>
    %cst_24 = arith.constant 9.99999974E-6 : f32
    %41 = vector.broadcast %cst_24 : f32 to vector<1x128xf32>
    %42 = arith.addf %40, %41 : vector<1x128xf32>
    %43 = math.rsqrt %42 : vector<1x128xf32>
    %44 = arith.mulf %43, %28 : vector<1x128xf32>
    %45 = vector.broadcast %44 : vector<1x128xf32> to vector<128x128xf32>
    %46 = arith.mulf %35, %45 : vector<128x128xf32>
    %47 = vector.broadcast %29 : vector<1x128xf32> to vector<128x128xf32>
    %48 = arith.addf %46, %47 : vector<128x128xf32>
    %cst_25 = arith.constant 0.000000e+00 : f32
    %49 = vector.broadcast %cst_25 : f32 to vector<128x128xf32>
    %50 = arith.maximumf %48, %49 : vector<128x128xf32>
    %c0_26 = arith.constant 0 : index
    %c0_27 = arith.constant 0 : index
    %51 = vector.load %arg7[%c0_26, %c0_27] : memref<128x50xf32, #tpu.memory_space<vmem>>, vector<128x50xf32>
    %cst_28 = arith.constant dense<0.000000e+00> : vector<128x50xf32>
    %52 = tpu.matmul %50, %51, %cst_28 {dimension_numbers = #tpu.dot_dimension_numbers<[1], [0], [0], [1], [0, 0, 1, 1], [], []>} : vector<128x128xf32>, vector<128x50xf32>, vector<128x50xf32> -> vector<128x50xf32>
    %c0_29 = arith.constant 0 : index
    %c0_30 = arith.constant 0 : index
    %53 = vector.load %arg8[%c0_29, %c0_30] : memref<1x50xf32, #tpu.memory_space<vmem>>, vector<1x50xf32>
    %54 = vector.broadcast %53 : vector<1x50xf32> to vector<128x50xf32>
    %55 = arith.addf %52, %54 : vector<128x50xf32>
    %c0_31 = arith.constant 0 : index
    %c0_32 = arith.constant 0 : index
    %56 = vector.load %arg9[%c0_31, %c0_32] : memref<128x50xf32, #tpu.memory_space<vmem>>, vector<128x50xf32>
    tpu.vector_store %arg9[%c0_31, %c0_32], %55 {strides = array<i32>} : memref<128x50xf32, #tpu.memory_space<vmem>>, vector<128x50xf32>,
    return
  }
}

</mosaic_0001>

<bundles_post_ra>
// kernel: tpu_custom_call.1
= control target key start
LH: loop header
LB: loop body
LE: loop exit
PB: predicated region body
PF: predicated region fallthrough
CT: control target
= control target key end

     0   :  { %v1367_v3 = vmov 0.0   ;;  %vm113_vm0 = vcmask 1046528   ;;  %vm1368_vm1 = vmmov 1   ;;  %vm64_vm3 = vcmask 515072   ;;  %s2179_s1 = inlined_call_operand.vmem [shape: f32[63,256], index: 1, kind: input, shape index: {}]   ;;  %s2180_s0 = inlined_call_operand.vmem [shape: f32[128,63], index: 0, kind: input, shape index: {}]   ;;  %s2181_s4 = inlined_call_operand.vmem [shape: f32[256,128], index: 4, kind: input, shape index: {}]   ;;  %s2182_s2 = inlined_call_operand.vmem [shape: f32[1,256], index: 2, kind: input, shape index: {}]   ;;  %s2183_s3 = inlined_call_operand.vmem [shape: f32[1,256], index: 3, kind: input, shape index: {}]   ;;  %s2184_s7 = inlined_call_operand.vmem [shape: f32[128,50], index: 7, kind: input, shape index: {}]   ;;  %s2185_s5 = inlined_call_operand.vmem [shape: f32[1,128], index: 5, kind: input, shape index: {}]   ;;  %s2186_s6 = inlined_call_operand.vmem [shape: f32[1,128], index: 6, kind: input, shape index: {}]   ;;  %s2187_s8 = inlined_call_operand.vmem [shape: f32[1,50], index: 8, kind: input, shape index: {}]   ;;  %s2188_s9 = inlined_call_operand.vmem [shape: f32[128,50], index: 9, kind: output, shape index: {}]  }
   0x1   :  { %v49_v0 = vld [vmem:[%s2179_s1 + $0x8] sm:$0xff]  ;;  %v51_v1 = vld [vmem:[%s2179_s1 + $0x18] sm:$0xff]  ;;  %v48_v2 = vld [vmem:[%s2179_s1] sm:$0xff]  ;;  %184 = vmatprep.mubr.f32.mxu0 %v1367_v3  ;;  %vm1052_vm4 = vcmask 408576  }
   0x2   :  { %v1261_v4 = vpack.c.bf16 %v51_v1, %v49_v0  ;;  %v50_v5 = vld [vmem:[%s2179_s1 + $0x10] sm:$0xff]  ;;  %v53_v6 = vld [vmem:[%s2179_s1 + $0x28] sm:$0xff]  ;;  %v55_v7 = vld [vmem:[%s2179_s1 + $0x38] sm:$0xff] }
   0x3   :  { %v1263_v8 = vpack.c.bf16 %v50_v5, %v48_v2  ;;  %v1265_v9 = vpack.c.bf16 %v55_v7, %v53_v6  ;;  %v52_v10 = vld [vmem:[%s2179_s1 + $0x20] sm:$0xff]  ;;  %v54_v11 = vld [vmem:[%s2179_s1 + $0x30] sm:$0xff]  ;;  %v57_v12 = vld [vmem:[%s2179_s1 + $0x48] sm:$0xff] }
   0x4   :  { %1262 = vmatprep.subr.bf16.mxu0 %v1261_v4  ;;  %v59_v13 = vld [vmem:[%s2179_s1 + $0x58] sm:$0xff]  ;;  %v1267_v14 = vpack.c.bf16 %v54_v11, %v52_v10  ;;  %v56_v16 = vld [vmem:[%s2179_s1 + $0x40] sm:$0xff]  ;;  %v58_v17 = vld [vmem:[%s2179_s1 + $0x50] sm:$0xff] }
   0x5   :  { %1264 = vmatpush1.bf16.msra.mxu0 %v1263_v8  ;;  %v1269_v15 = vpack.c.bf16 %v59_v13, %v57_v12  ;;  %v61_v18 = vld [vmem:[%s2179_s1 + $0x68] sm:$0xff]  ;;  %v63_v19 = vld [vmem:[%s2179_s1 + $0x78] sm:$0x7f]  ;;  %v1271_v20 = vpack.c.bf16 %v58_v17, %v56_v16  ;;  %v60_v22 = vld [vmem:[%s2179_s1 + $0x60] sm:$0xff] }
   0x6   :  { %1266 = vmatprep.subr.bf16.mxu0 %v1265_v9  ;;  %v1273_v21 = vpack.c.bf16 %v63_v19, %v61_v18  ;;  %v62_v23 = vld [vmem:[%s2179_s1 + $0x70] sm:$0x7f]  ;;  %vm1274_vm2 = vmpackc.low %vm113_vm0, %vm1368_vm1  ;;  %v32_v25 = vld [vmem:[%s2180_s0] sm:$0xff] }
   0x7   :  { %v1276_v24 = vpack.c.bf16 %v62_v23, %v60_v22  ;;  %v33_v26 = vld [vmem:[%s2180_s0 + $0x8] sm:$0xff]  ;;  %v34_v27 = vld [vmem:[%s2180_s0 + $0x10] sm:$0xff]  ;;  %v35_v28 = vld [vmem:[%s2180_s0 + $0x18] sm:$0xff] }
   0x8   :  { %v36_v29 = vld [vmem:[%s2180_s0 + $0x20] sm:$0xff]  ;;  %v37_v30 = vld [vmem:[%s2180_s0 + $0x28] sm:$0xff]  ;;  %v38_v31 = vld [vmem:[%s2180_s0 + $0x30] sm:$0xff] }
   0x9   :  { %1268 = vmatpush1.bf16.msra.mxu0 %v1267_v14  ;;  %v39_v32 = vld [vmem:[%s2180_s0 + $0x38] sm:$0xff]  ;;  %v40_v33 = vld [vmem:[%s2180_s0 + $0x40] sm:$0xff]  ;;  %v41_v34 = vld [vmem:[%s2180_s0 + $0x48] sm:$0xff] }
   0xa   :  { %1270 = vmatprep.subr.bf16.mxu0 %v1269_v15  ;;  %v42_v35 = vld [vmem:[%s2180_s0 + $0x50] sm:$0xff]  ;;  %v43_v36 = vld [vmem:[%s2180_s0 + $0x58] sm:$0xff]  ;;  %v44_v37 = vld [vmem:[%s2180_s0 + $0x60] sm:$0xff] }
   0xb   :  { %v45_v38 = vld [vmem:[%s2180_s0 + $0x68] sm:$0xff]  ;;  %v46_v39 = vld [vmem:[%s2180_s0 + $0x70] sm:$0xff]  ;;  %v47_v40 = vld [vmem:[%s2180_s0 + $0x78] sm:$0xff] }
   0xc   :  { %v584_v43 = vld [vmem:[%s2181_s4 + $0x80] sm:$0xff]  ;;  %v585_v44 = vld [vmem:[%s2181_s4 + $0x88] sm:$0xff]  ;;  %v586_v52 = vld [vmem:[%s2181_s4 + $0x90] sm:$0xff] }
   0xd   :  { %1272 = vmatpush1.bf16.msra.mxu0 %v1271_v20  ;;  %v1279_v45 = vpack.c.bf16 %v585_v44, %v584_v43  ;;  %v568_v46 = vld [vmem:[%s2181_s4] sm:$0xff]  ;;  %v569_v47 = vld [vmem:[%s2181_s4 + $0x8] sm:$0xff]  ;;  %v587_v53 = vld [vmem:[%s2181_s4 + $0x98] sm:$0xff] }
   0xe   :  { %1275 = vmatprep.subr.msk.bf16.mxu0 %vm1274_vm2, %v1273_v21  ;;  %v1281_v48 = vpack.c.bf16 %v569_v47, %v568_v46  ;;  %v1283_v55 = vpack.c.bf16 %v587_v53, %v586_v52  ;;  %v570_v56 = vld [vmem:[%s2181_s4 + $0x10] sm:$0xff]  ;;  %v571_v57 = vld [vmem:[%s2181_s4 + $0x18] sm:$0xff]  ;;  %v588_v62 = vld [vmem:[%s2181_s4 + $0xa0] sm:$0xff] }
   0xf   :  { %1280 = vmatprep.subr.bf16.mxu1 %v1279_v45  ;;  %v1285_v58 = vpack.c.bf16 %v571_v57, %v570_v56  ;;  %v589_v63 = vld [vmem:[%s2181_s4 + $0xa8] sm:$0xff]  ;;  %v572_v2 = vld [vmem:[%s2181_s4 + $0x20] sm:$0xff]  ;;  %v590_v8 = vld [vmem:[%s2181_s4 + $0xb0] sm:$0xff] }
  0x10   :  { %1282 = vmatpush3.bf16.msra.mxu1 %v1281_v48  ;;  %v1287_v1 = vpack.c.bf16 %v589_v63, %v588_v62  ;;  %v591_v9 = vld [vmem:[%s2181_s4 + $0xb8] sm:$0xff]  ;;  %v574_v12 = vld [vmem:[%s2181_s4 + $0x30] sm:$0xff]  ;;  %v592_v18 = vld [vmem:[%s2181_s4 + $0xc0] sm:$0xff] }
  0x11   :  { %1278 = vmatpush1.bf16.msk.msra.mxu0 %vm1274_vm2, %v1276_v24  ;;  %1284 = vmatprep.subr.bf16.mxu1 %v1283_v55  ;;  %v1291_v11 = vpack.c.bf16 %v591_v9, %v590_v8  ;;  %v575_v13 = vld [vmem:[%s2181_s4 + $0x38] sm:$0xff]  ;;  %v593_v19 = vld [vmem:[%s2181_s4 + $0xc8] sm:$0xff]  ;;  %v576_v22 = vld [vmem:[%s2181_s4 + $0x40] sm:$0xff] }
  0x12   :  { %v1293_v14 = vpack.c.bf16 %v575_v13, %v574_v12  ;;  %v1295_v21 = vpack.c.bf16 %v593_v19, %v592_v18  ;;  %v577_v23 = vld [vmem:[%s2181_s4 + $0x48] sm:$0xff]  ;;  %v580_v44 = vld [vmem:[%s2181_s4 + $0x60] sm:$0xff]  ;;  %v598_v47 = vld [vmem:[%s2181_s4 + $0xf0] sm:$0xff] }
  0x13   :  { %v1297_v24 = vpack.c.bf16 %v577_v23, %v576_v22  ;;  %v581_v45 = vld [vmem:[%s2181_s4 + $0x68] sm:$0xff]  ;;  %v599_v48 = vld [vmem:[%s2181_s4 + $0xf8] sm:$0xff] }
  0x14   :  { %1075 = vmatmul.mubr.msk.f32.vlgmr.msra.gmra.mrb[0].mxu0 %vm64_vm3, %v32_v25  ;;  %1286 = vmatpush3.bf16.msra.mxu1 %v1285_v58  ;;  %v1305_v46 = vpack.c.bf16 %v581_v45, %v580_v44  ;;  %v1307_v53 = vpack.c.bf16 %v599_v48, %v598_v47 }
  0x15   :  { %190 = vmatprep.mubr.f32.mxu0 %v1367_v3  ;;  %1288 = vmatprep.subr.bf16.mxu1 %v1287_v1 }
  0x18   :  { %1076 = vmatmul.mubr.msk.f32.gmra.mrb[2].mxu0 %vm64_vm3, %v33_v26 }
  0x19   :  { %196 = vmatprep.mubr.f32.mxu0 %v1367_v3 }
  0x1c   :  { %1077 = vmatmul.mubr.msk.f32.gmra.mrb[4].mxu0 %vm64_vm3, %v34_v27 }
  0x1d   :  { %202 = vmatprep.mubr.f32.mxu0 %v1367_v3 }
  0x20   :  { %1078 = vmatmul.mubr.msk.f32.gmra.mrb[6].mxu0 %vm64_vm3, %v35_v28  ;;  %v594_v28 = vld [vmem:[%s2181_s4 + $0xd0] sm:$0xff] }
  0x21   :  { %208 = vmatprep.mubr.f32.mxu0 %v1367_v3 }
  0x24   :  { %1079 = vmatmul.mubr.msk.f32.gmra.mrb[8].mxu0 %vm64_vm3, %v36_v29  ;;  %v595_v29 = vld [vmem:[%s2181_s4 + $0xd8] sm:$0xff] }
  0x25   :  { %214 = vmatprep.mubr.f32.mxu0 %v1367_v3 }
  0x28   :  { %1080 = vmatmul.mubr.msk.f32.gmra.mrb[10].mxu0 %vm64_vm3, %v37_v30 }
  0x29   :  { %220 = vmatprep.mubr.f32.mxu0 %v1367_v3 }
  0x2c   :  { %1081 = vmatmul.mubr.msk.f32.gmra.mrb[12].mxu0 %vm64_vm3, %v38_v31  ;;  %v1299_v31 = vpack.c.bf16 %v595_v29, %v594_v28 }
  0x2d   :  { %226 = vmatprep.mubr.f32.mxu0 %v1367_v3 }
  0x30   :  { %1082 = vmatmul.mubr.msk.f32.gmra.mrb[14].mxu0 %vm64_vm3, %v39_v32  ;;  %v578_v32 = vld [vmem:[%s2181_s4 + $0x50] sm:$0xff] }
  0x31   :  { %232 = vmatprep.mubr.f32.mxu0 %v1367_v3 }
  0x34   :  { %1083 = vmatmul.mubr.msk.f32.gmra.mrb[16].mxu0 %vm64_vm3, %v40_v33  ;;  %v579_v33 = vld [vmem:[%s2181_s4 + $0x58] sm:$0xff] }
  0x35   :  { %238 = vmatprep.mubr.f32.mxu0 %v1367_v3 }
  0x38   :  { %1084 = vmatmul.mubr.msk.f32.gmra.mrb[18].mxu0 %vm64_vm3, %v41_v34  ;;  %v1301_v34 = vpack.c.bf16 %v579_v33, %v578_v32 }
  0x39   :  { %244 = vmatprep.mubr.f32.mxu0 %v1367_v3 }
  0x3c   :  { %1085 = vmatmul.mubr.msk.f32.gmra.mrb[20].mxu0 %vm64_vm3, %v42_v35 }
  0x3d   :  { %250 = vmatprep.mubr.f32.mxu0 %v1367_v3 }
  0x40   :  { %1086 = vmatmul.mubr.msk.f32.gmra.mrb[22].mxu0 %vm64_vm3, %v43_v36 }
  0x41   :  { %256 = vmatprep.mubr.f32.mxu0 %v1367_v3 }
  0x44   :  { %1087 = vmatmul.mubr.msk.f32.gmra.mrb[24].mxu0 %vm64_vm3, %v44_v37 }
  0x45   :  { %262 = vmatprep.mubr.f32.mxu0 %v1367_v3 }
  0x48   :  { %1088 = vmatmul.mubr.msk.f32.gmra.mrb[26].mxu0 %vm64_vm3, %v45_v38  ;;  %v596_v38 = vld [vmem:[%s2181_s4 + $0xe0] sm:$0xff] }
  0x49   :  { %268 = vmatprep.mubr.f32.mxu0 %v1367_v3 }
  0x4c   :  { %1089 = vmatmul.mubr.msk.f32.gmra.mrb[28].mxu0 %vm64_vm3, %v46_v39  ;;  %v597_v39 = vld [vmem:[%s2181_s4 + $0xe8] sm:$0xff] }
  0x4d   :  { %274 = vmatprep.mubr.f32.mxu0 %v1367_v3  ;;  %v573_v3 = vld [vmem:[%s2181_s4 + $0x28] sm:$0xff]  ;;  %v1303_v43 = vpack.c.bf16 %v597_v39, %v596_v38 }
  0x4e   :  { %v1289_v4 = vpack.c.bf16 %v573_v3, %v572_v2 }
  0x50   :  { %1090 = vmatmul.mubr.msk.f32.gmra.mrb[30].mxu0 %vm64_vm3, %v47_v40  ;;  %1290 = vmatpush3.bf16.msra.mxu1 %v1289_v4 }
  0x51   :  { %1292 = vmatprep.subr.bf16.mxu1 %v1291_v11 }
  0x54   :  { %1294 = vmatpush3.bf16.msra.mxu1 %v1293_v14 }
  0x55   :  { %1296 = vmatprep.subr.bf16.mxu1 %v1295_v21 }
  0x58   :  { %1298 = vmatpush3.bf16.msra.mxu1 %v1297_v24 }
  0x59   :  { %1300 = vmatprep.subr.bf16.mxu1 %v1299_v31 }
  0x5c   :  { %1302 = vmatpush3.bf16.msra.mxu1 %v1301_v34 }
  0x5d   :  { %1304 = vmatprep.subr.bf16.mxu1 %v1303_v43 }
  0x60   :  { %1306 = vmatpush3.bf16.msra.mxu1 %v1305_v46 }
  0x61   :  { %1308 = vmatprep.subr.bf16.mxu1 %v1307_v53 }
  0xe7   :  { %v1547_v41 = vpop.f32.mrb[0].mxu0 }
  0xe8   :  { %v1549_v42 = vpop.f32.mrb[1].mxu0 }
  0xeb   :  { %v1563_v49 = vpop.f32.mrb[2].mxu0 }
  0xec   :  { %v283_v50 = vadd.f32 %v1563_v49, %v1547_v41  ;;  %v1567_v51 = vpop.f32.mrb[3].mxu0 }
  0xed   :  { %v304_v54 = vadd.f32 %v1567_v51, %v1549_v42 }
  0xef   :  { %v1583_v59 = vpop.f32.mrb[4].mxu0 }
  0xf0   :  { %v284_v60 = vadd.f32 %v283_v50, %v1583_v59  ;;  %v1586_v61 = vpop.f32.mrb[5].mxu0  ;;  %v582_v50 = vld [vmem:[%s2181_s4 + $0x70] sm:$0xff] }
  0xf1   :  { %v305_v0 = vadd.f32 %v304_v54, %v1586_v61  ;;  %v583_v54 = vld [vmem:[%s2181_s4 + $0x78] sm:$0xff] }
  0xf2   :  { %v1309_v57 = vpack.c.bf16 %v583_v54, %v582_v50 }
  0xf3   :  { %v1601_v5 = vpop.f32.mrb[6].mxu0 }
  0xf4   :  { %v285_v6 = vadd.f32 %v284_v60, %v1601_v5  ;;  %v1604_v7 = vpop.f32.mrb[7].mxu0  ;;  %1310 = vmatpush3.bf16.msra.mxu1 %v1309_v57 }
  0xf5   :  { %v306_v10 = vadd.f32 %v305_v0, %v1604_v7 }
  0xf7   :  { %v1619_v15 = vpop.f32.mrb[8].mxu0 }
  0xf8   :  { %v286_v16 = vadd.f32 %v285_v6, %v1619_v15  ;;  %v1622_v17 = vpop.f32.mrb[9].mxu0 }
  0xf9   :  { %v307_v20 = vadd.f32 %v306_v10, %v1622_v17 }
  0xfb   :  { %v1637_v25 = vpop.f32.mrb[10].mxu0 }
  0xfc   :  { %v287_v26 = vadd.f32 %v286_v16, %v1637_v25  ;;  %v1640_v27 = vpop.f32.mrb[11].mxu0 }
  0xfd   :  { %v308_v30 = vadd.f32 %v307_v20, %v1640_v27 }
  0xff   :  { %v1655_v35 = vpop.f32.mrb[12].mxu0 }
 0x100   :  { %v288_v36 = vadd.f32 %v287_v26, %v1655_v35  ;;  %v1658_v37 = vpop.f32.mrb[13].mxu0 }
 0x101   :  { %v309_v40 = vadd.f32 %v308_v30, %v1658_v37 }
 0x103   :  { %v1682_v52 = vpop.f32.mrb[14].mxu0 }
 0x104   :  { %v289_v55 = vadd.f32 %v288_v36, %v1682_v52  ;;  %v1688_v56 = vpop.f32.mrb[15].mxu0 }
 0x105   :  { %v310_v58 = vadd.f32 %v309_v40, %v1688_v56 }
 0x107   :  { %v234_v60 = vpop.f32.mrb[16].mxu0 }
 0x108   :  { %v290_v62 = vadd.f32 %v289_v55, %v234_v60  ;;  %v1691_v63 = vpop.f32.mrb[17].mxu0 }
 0x109   :  { %v311_v0 = vadd.f32 %v310_v58, %v1691_v63 }
 0x10b   :  { %v240_v1 = vpop.f32.mrb[18].mxu0 }
 0x10c   :  { %v291_v2 = vadd.f32 %v290_v62, %v240_v1  ;;  %v1694_v3 = vpop.f32.mrb[19].mxu0 }
 0x10d   :  { %v312_v4 = vadd.f32 %v311_v0, %v1694_v3 }
 0x10f   :  { %v246_v6 = vpop.f32.mrb[20].mxu0 }
 0x110   :  { %v292_v8 = vadd.f32 %v291_v2, %v246_v6  ;;  %v1697_v9 = vpop.f32.mrb[21].mxu0 }
 0x111   :  { %v313_v10 = vadd.f32 %v312_v4, %v1697_v9 }
 0x113   :  { %v252_v11 = vpop.f32.mrb[22].mxu0 }
 0x114   :  { %v293_v12 = vadd.f32 %v292_v8, %v252_v11  ;;  %v1700_v13 = vpop.f32.mrb[23].mxu0 }
 0x115   :  { %v314_v14 = vadd.f32 %v313_v10, %v1700_v13 }
 0x117   :  { %v258_v16 = vpop.f32.mrb[24].mxu0 }
 0x118   :  { %v294_v18 = vadd.f32 %v293_v12, %v258_v16  ;;  %v260_v19 = vpop.f32.mrb[25].mxu0 }
 0x119   :  { %v315_v20 = vadd.f32 %v314_v14, %v260_v19 }
 0x11b   :  { %v264_v21 = vpop.f32.mrb[26].mxu0 }
 0x11c   :  { %v295_v22 = vadd.f32 %v294_v18, %v264_v21  ;;  %v266_v23 = vpop.f32.mrb[27].mxu0 }
 0x11d   :  { %v316_v24 = vadd.f32 %v315_v20, %v266_v23 }
 0x11f   :  { %v270_v26 = vpop.f32.mrb[28].mxu0 }
 0x120   :  { %v296_v28 = vadd.f32 %v295_v22, %v270_v26  ;;  %v272_v29 = vpop.f32.mrb[29].mxu0 }
 0x121   :  { %v317_v30 = vadd.f32 %v316_v24, %v272_v29 }
 0x123   :  { %v276_v31 = vpop.f32.mrb[30].mxu0 }
 0x124   :  { %v297_v32 = vadd.f32 %v296_v28, %v276_v31  ;;  %v278_v33 = vpop.f32.mrb[31].mxu0 }
 0x125   :  { %v318_v34 = vadd.f32 %v317_v30, %v278_v33 }
 0x126   :  { %v298_v36 = vrot.slane %v297_v32, 4 }
 0x127   :  { %v319_v38 = vrot.slane %v318_v34, 4 }
 0x128   :  { %v299_v39 = vadd.f32 %v298_v36, %v297_v32 }
 0x129   :  { %v320_v40 = vadd.f32 %v319_v38, %v318_v34 }
 0x12a   :  { %v300_v43 = vrot.slane %v299_v39, 2 }
 0x12b   :  { %v321_v44 = vrot.slane %v320_v40, 2 }
 0x12c   :  { %v301_v45 = vadd.f32 %v300_v43, %v299_v39 }
 0x12d   :  { %v322_v46 = vadd.f32 %v321_v44, %v320_v40 }
 0x12e   :  { %v302_v47 = vrot.slane %v301_v45, 1 }
 0x12f   :  { %v323_v48 = vrot.slane %v322_v46, 1 }
 0x130   :  { %v303_v50 = vadd.f32 %v302_v47, %v301_v45 }
 0x131   :  { %v324_v54 = vadd.f32 %v323_v48, %v322_v46 }
 0x132   :  { %v326_v53 = vmul.f32 0.0078125, %v303_v50 }
 0x134   :  { %v1704_v55 = vsub.f32 %v1547_v41, %v326_v53  ;;  %v1707_v57 = vsub.f32 %v1563_v49, %v326_v53  ;;  %v1710_v58 = vsub.f32 %v1583_v59, %v326_v53  ;;  %v1713_v62 = vsub.f32 %v1601_v5, %v326_v53 }
 0x135   :  { %v1716_v0 = vsub.f32 %v1619_v15, %v326_v53  ;;  %v1719_v2 = vsub.f32 %v1637_v25, %v326_v53  ;;  %v1722_v4 = vsub.f32 %v1655_v35, %v326_v53  ;;  %v1725_v41 = vsub.f32 %v1682_v52, %v326_v53 }
 0x136   :  { %v1727_v49 = vsub.f32 %v234_v60, %v326_v53  ;;  %v1729_v8 = vsub.f32 %v240_v1, %v326_v53  ;;  %v1731_v59 = vsub.f32 %v246_v6, %v326_v53  ;;  %v1733_v5 = vsub.f32 %v252_v11, %v326_v53 }
 0x137   :  { %v1735_v10 = vsub.f32 %v258_v16, %v326_v53  ;;  %v1737_v15 = vsub.f32 %v264_v21, %v326_v53  ;;  %v1739_v25 = vsub.f32 %v270_v26, %v326_v53  ;;  %v1741_v12 = vsub.f32 %v276_v31, %v326_v53 }
 0x138   :  { %v360_v35 = vmul.f32 %v1704_v55, %v1704_v55  ;;  %v362_v52 = vmul.f32 %v1707_v57, %v1707_v57  ;;  %v327_v60 = vmul.f32 0.0078125, %v324_v54  ;;  %v364_v1 = vmul.f32 %v1710_v58, %v1710_v58 }
 0x139   :  { %v366_v6 = vmul.f32 %v1713_v62, %v1713_v62  ;;  %v376_v39 = vmul.f32 %v1727_v49, %v1727_v49  ;;  %v378_v45 = vmul.f32 %v1729_v8, %v1729_v8  ;;  %v380_v50 = vmul.f32 %v1731_v59, %v1731_v59 }
 0x13a   :  { %v392_v11 = vadd.f32 %v362_v52, %v360_v35  ;;  %v1752_v14 = vsub.f32 %v1549_v42, %v327_v60  ;;  %v1755_v16 = vsub.f32 %v1567_v51, %v327_v60  ;;  %v1758_v18 = vsub.f32 %v1586_v61, %v327_v60 }
 0x13b   :  { %v1761_v20 = vsub.f32 %v1604_v7, %v327_v60  ;;  %v1764_v21 = vsub.f32 %v1622_v17, %v327_v60  ;;  %v1767_v22 = vsub.f32 %v1640_v27, %v327_v60  ;;  %v1770_v24 = vsub.f32 %v1658_v37, %v327_v60 }
 0x13c   :  { %v393_v42 = vadd.f32 %v392_v11, %v364_v1  ;;  %v1773_v26 = vsub.f32 %v1688_v56, %v327_v60  ;;  %v1776_v51 = vsub.f32 %v1691_v63, %v327_v60  ;;  %v1779_v61 = vsub.f32 %v1694_v3, %v327_v60 }
 0x13d   :  { %v1782_v7 = vsub.f32 %v1697_v9, %v327_v60  ;;  %v1785_v17 = vsub.f32 %v1700_v13, %v327_v60  ;;  %v1787_v27 = vsub.f32 %v260_v19, %v327_v60  ;;  %v1789_v37 = vsub.f32 %v266_v23, %v327_v60 }
 0x13e   :  { %v368_v56 = vmul.f32 %v1716_v0, %v1716_v0  ;;  %v394_v28 = vadd.f32 %v393_v42, %v366_v6  ;;  %v1793_v30 = vsub.f32 %v272_v29, %v327_v60  ;;  %v1795_v63 = vsub.f32 %v278_v33, %v327_v60 }
 0x13f   :  { %v361_v3 = vmul.f32 %v1752_v14, %v1752_v14  ;;  %v363_v9 = vmul.f32 %v1755_v16, %v1755_v16  ;;  %v370_v13 = vmul.f32 %v1719_v2, %v1719_v2  ;;  %v372_v23 = vmul.f32 %v1722_v4, %v1722_v4 }
 0x140   :  { %v395_v19 = vadd.f32 %v394_v28, %v368_v56  ;;  %v365_v29 = vmul.f32 %v1758_v18, %v1758_v18  ;;  %v374_v33 = vmul.f32 %v1725_v41, %v1725_v41  ;;  %v367_v36 = vmul.f32 %v1761_v20, %v1761_v20 }
 0x141   :  { %v413_v32 = vadd.f32 %v363_v9, %v361_v3  ;;  %v369_v43 = vmul.f32 %v1764_v21, %v1764_v21  ;;  %v371_v47 = vmul.f32 %v1767_v22, %v1767_v22  ;;  %v373_v54 = vmul.f32 %v1770_v24, %v1770_v24 }
 0x142   :  { %v396_v31 = vadd.f32 %v395_v19, %v370_v13  ;;  %v382_v52 = vmul.f32 %v1733_v5, %v1733_v5  ;;  %v375_v1 = vmul.f32 %v1773_v26, %v1773_v26  ;;  %v384_v11 = vmul.f32 %v1735_v10, %v1735_v10 }
 0x143   :  { %v414_v38 = vadd.f32 %v413_v32, %v365_v29  ;;  %v377_v56 = vmul.f32 %v1776_v51, %v1776_v51  ;;  %v386_v3 = vmul.f32 %v1737_v15, %v1737_v15  ;;  %v379_v13 = vmul.f32 %v1779_v61, %v1779_v61 }
 0x144   :  { %v397_v34 = vadd.f32 %v396_v31, %v372_v23  ;;  %v388_v23 = vmul.f32 %v1739_v25, %v1739_v25  ;;  %v381_v29 = vmul.f32 %v1782_v7, %v1782_v7 }
 0x145   :  { %v415_v44 = vadd.f32 %v414_v38, %v367_v36  ;;  %v383_v36 = vmul.f32 %v1785_v17, %v1785_v17 }
 0x146   :  { %v398_v40 = vadd.f32 %v397_v34, %v374_v33  ;;  %v390_v33 = vmul.f32 %v1741_v12, %v1741_v12 }
 0x147   :  { %v416_v48 = vadd.f32 %v415_v44, %v369_v43 }
 0x148   :  { %v399_v46 = vadd.f32 %v398_v40, %v376_v39  ;;  %v385_v40 = vmul.f32 %v1787_v27, %v1787_v27 }
 0x149   :  { %v417_v35 = vadd.f32 %v416_v48, %v371_v47  ;;  %v389_v48 = vmul.f32 %v1793_v30, %v1793_v30 }
 0x14a   :  { %v400_v53 = vadd.f32 %v399_v46, %v378_v45  ;;  %v387_v45 = vmul.f32 %v1789_v37, %v1789_v37 }
 0x14b   :  { %v418_v6 = vadd.f32 %v417_v35, %v373_v54  ;;  %v391_v54 = vmul.f32 %v1795_v63, %v1795_v63 }
 0x14c   :  { %v401_v60 = vadd.f32 %v400_v53, %v380_v50 }
 0x14d   :  { %v419_v28 = vadd.f32 %v418_v6, %v375_v1 }
 0x14e   :  { %v402_v42 = vadd.f32 %v401_v60, %v382_v52 }
 0x14f   :  { %v420_v19 = vadd.f32 %v419_v28, %v377_v56 }
 0x150   :  { %v403_v9 = vadd.f32 %v402_v42, %v384_v11  ;;  %v441_v42 = vlaneseq }
 0x151   :  { %v421_v32 = vadd.f32 %v420_v19, %v379_v13 }
 0x152   :  { %v404_v31 = vadd.f32 %v403_v9, %v386_v3  ;;  %v442_v13 = vshrl.u32 %v441_v42, 7 }
 0x153   :  { %v422_v38 = vadd.f32 %v421_v32, %v381_v29  ;;  %v281_v32 = vld [vmem:[%s2182_s2] sm:$0x3] }
 0x154   :  { %v405_v34 = vadd.f32 %v404_v31, %v388_v23  ;;  %v1851_v31 = vsub.s32 0, %v442_v13 }
 0x155   :  { %v423_v43 = vadd.f32 %v422_v38, %v383_v36 }
 0x156   :  { %v406_v39 = vadd.f32 %v405_v34, %v390_v33  ;;  %v444_v34 = vrot.slane %v281_v32, %v1851_v31 }
 0x157   :  { %v424_v46 = vadd.f32 %v423_v43, %v385_v40  ;;  %v447_v40 = vsub.s32 1, %v442_v13 }
 0x158   :  { %v407_v44 = vrot.slane %v406_v39, 4 }
 0x159   :  { %v425_v50 = vadd.f32 %v424_v46, %v387_v45  ;;  %v448_v46 = vrot.slane %v281_v32, %v447_v40 }
 0x15a   :  { %v408_v47 = vadd.f32 %v407_v44, %v406_v39 }
 0x15b   :  { %v426_v35 = vadd.f32 %v425_v50, %v389_v48 }
 0x15c   :  { %v409_v53 = vrot.slane %v408_v47, 2 }
 0x15d   :  { %v427_v60 = vadd.f32 %v426_v35, %v391_v54 }
 0x15e   :  { %v410_v52 = vadd.f32 %v409_v53, %v408_v47  ;;  %v282_v47 = vld [vmem:[%s2183_s3] sm:$0x3] }
 0x15f   :  { %v428_v6 = vrot.slane %v427_v60, 4  ;;  %v1870_v53 = vrot.slane %v282_v47, %v1851_v31  ;;  %v1875_v35 = vrot.slane %v282_v47, %v447_v40 }
 0x160   :  { %v411_v1 = vrot.slane %v410_v52, 1 }
 0x161   :  { %v429_v56 = vadd.f32 %v428_v6, %v427_v60 }
 0x162   :  { %v412_v11 = vadd.f32 %v411_v1, %v410_v52 }
 0x163   :  { %v430_v3 = vrot.slane %v429_v56, 2 }
 0x164   :  { %v434_v28 = vmul.f32 0.0078125, %v412_v11 }
 0x165   :  { %v431_v19 = vadd.f32 %v430_v3, %v429_v56 }
 0x166   :  { %v436_v9 = vadd.f32 1e-05, %v434_v28 }
 0x167   :  { %v432_v23 = vrot.slane %v431_v19, 1 }
 0x168   :  { %1361 = vrsqrt.f32 %v436_v9 }
 0x169   :  { %v433_v29 = vadd.f32 %v432_v23, %v431_v19 }
 0x16b   :  { %v435_v33 = vmul.f32 0.0078125, %v433_v29 }
 0x16d   :  { %v437_v36 = vadd.f32 1e-05, %v435_v33 }
 0x16f   :  { %1363 = vrsqrt.f32 %v437_v36 }
 0x172   :  { %v1362_v38 = vpop.eup %1361 }
 0x173   :  { %v451_v39 = vmul.f32 %v1362_v38, %v444_v34 }
 0x175   :  { %v1858_v43 = vrot.slane %v451_v39, %v1851_v31 }
 0x177   :  { %v1862_v44 = vmul.f32 %v1858_v43, %v1741_v12  ;;  %v461_v45 = vmul.f32 %v1858_v43, %v1704_v55  ;;  %v463_v1 = vmul.f32 %v1858_v43, %v1707_v57 }
 0x179   :  { %v1364_v48 = vpop.eup %1363  ;;  %v504_v60 = vadd.f32 %v1870_v53, %v461_v45  ;;  %v506_v28 = vadd.f32 %v1870_v53, %v463_v1 }
 0x17a   :  { %v452_v50 = vmul.f32 %v1364_v48, %v448_v46 }
 0x17b   :  { %v536_v56 = vmax.f32 %v504_v60, 0.0  ;;  %v538_v9 = vmax.f32 %v506_v28, 0.0 }
 0x17c   :  { %v1873_v54 = vrot.slane %v452_v50, %v1851_v31 }
 0x17e   :  { %v1879_v12 = vmul.f32 %v1873_v54, %v1795_v63  ;;  %v462_v55 = vmul.f32 %v1873_v54, %v1752_v14  ;;  %v464_v52 = vmul.f32 %v1873_v54, %v1755_v16  ;;  %v466_v42 = vmul.f32 %v1873_v54, %v1758_v18 }
 0x17f   :  { %v465_v14 = vmul.f32 %v1858_v43, %v1710_v58  ;;  %v468_v57 = vmul.f32 %v1873_v54, %v1761_v20  ;;  %v467_v18 = vmul.f32 %v1858_v43, %v1713_v62  ;;  %v470_v58 = vmul.f32 %v1873_v54, %v1764_v21 }
 0x180   :  { %v505_v6 = vadd.f32 %v1875_v35, %v462_v55  ;;  %v507_v11 = vadd.f32 %v1875_v35, %v464_v52  ;;  %v509_v3 = vadd.f32 %v1875_v35, %v466_v42  ;;  %v469_v20 = vmul.f32 %v1858_v43, %v1716_v0 }
 0x181   :  { %v508_v13 = vadd.f32 %v1870_v53, %v465_v14  ;;  %v511_v23 = vadd.f32 %v1875_v35, %v468_v57  ;;  %v510_v32 = vadd.f32 %v1870_v53, %v467_v18  ;;  %v513_v34 = vadd.f32 %v1875_v35, %v470_v58 }
 0x182   :  { %v537_v63 = vmax.f32 %v505_v6, 0.0  ;;  %v539_v16 = vmax.f32 %v507_v11, 0.0  ;;  %v541_v19 = vmax.f32 %v509_v3, 0.0  ;;  %v472_v62 = vmul.f32 %v1873_v54, %v1767_v22 }
 0x183   :  { %v540_v29 = vmax.f32 %v508_v13, 0.0  ;;  %v543_v33 = vmax.f32 %v511_v23, 0.0  ;;  %v542_v36 = vmax.f32 %v510_v32, 0.0  ;;  %v512_v38 = vadd.f32 %v1870_v53, %v469_v20 }
 0x184   :  { %664 = vmatprep.mubr.f32.mxu1 %v537_v63  ;;  %v471_v21 = vmul.f32 %v1858_v43, %v1719_v2  ;;  %v545_v39 = vmax.f32 %v513_v34, 0.0  ;;  %v515_v40 = vadd.f32 %v1875_v35, %v472_v62  ;;  %v474_v0 = vmul.f32 %v1873_v54, %v1770_v24 }
 0x185   :  { %665 = vmatmul.mubr.f32.vlgmr.msra.gmra.mrb[0].mxu1 %v536_v56  ;;  %v544_v45 = vmax.f32 %v512_v38, 0.0  ;;  %v473_v22 = vmul.f32 %v1858_v43, %v1722_v4  ;;  %v476_v2 = vmul.f32 %v1873_v54, %v1773_v26  ;;  %v475_v24 = vmul.f32 %v1858_v43, %v1725_v41 }
 0x186   :  { %669 = vmatprep.mubr.f32.mxu1 %v539_v16  ;;  %v514_v46 = vadd.f32 %v1870_v53, %v471_v21  ;;  %v547_v47 = vmax.f32 %v515_v40, 0.0  ;;  %v517_v48 = vadd.f32 %v1875_v35, %v474_v0  ;;  %v478_v4 = vmul.f32 %v1873_v54, %v1776_v51 }
 0x187   :  { %v516_v55 = vadd.f32 %v1870_v53, %v473_v22  ;;  %v519_v60 = vadd.f32 %v1875_v35, %v476_v2  ;;  %v518_v6 = vadd.f32 %v1870_v53, %v475_v24  ;;  %v477_v26 = vmul.f32 %v1858_v43, %v1727_v49 }
 0x188   :  { %v546_v50 = vmax.f32 %v514_v46, 0.0  ;;  %v549_v52 = vmax.f32 %v517_v48, 0.0  ;;  %v521_v42 = vadd.f32 %v1875_v35, %v478_v4  ;;  %v480_v41 = vmul.f32 %v1873_v54, %v1779_v61  ;;  %v884_v48 = vld [vmem:[%s2184_s7] sm:$0xff] }
 0x189   :  { %670 = vmatmul.mubr.f32.gmra.mrb[2].mxu1 %v538_v9  ;;  %v548_v1 = vmax.f32 %v516_v55, 0.0  ;;  %v551_v11 = vmax.f32 %v519_v60, 0.0  ;;  %v550_v63 = vmax.f32 %v518_v6, 0.0  ;;  %v520_v56 = vadd.f32 %v1870_v53, %v477_v26  ;;  %v887_v55 = vld [vmem:[%s2184_s7 + $0x18] sm:$0xff]  ;;  %v888_v6 = vld [vmem:[%s2184_s7 + $0x20] sm:$0xff]  ;;  %v889_v26 = vld [vmem:[%s2184_s7 + $0x28] sm:$0xff] }
 0x18a   :  { %674 = vmatprep.mubr.f32.mxu1 %v541_v19  ;;  %v479_v51 = vmul.f32 %v1858_v43, %v1729_v8  ;;  %v553_v28 = vmax.f32 %v521_v42, 0.0  ;;  %v523_v14 = vadd.f32 %v1875_v35, %v480_v41  ;;  %v482_v49 = vmul.f32 %v1873_v54, %v1782_v7 }
 0x18b   :  { %v552_v16 = vmax.f32 %v520_v56, 0.0  ;;  %v481_v61 = vmul.f32 %v1858_v43, %v1731_v59  ;;  %v484_v8 = vmul.f32 %v1873_v54, %v1785_v17  ;;  %v483_v7 = vmul.f32 %v1858_v43, %v1733_v5 }
 0x18c   :  { %v522_v3 = vadd.f32 %v1870_v53, %v479_v51  ;;  %v555_v57 = vmax.f32 %v523_v14, 0.0  ;;  %v525_v9 = vadd.f32 %v1875_v35, %v482_v49  ;;  %v486_v59 = vmul.f32 %v1873_v54, %v1787_v27  ;;  %v890_v51 = vld [vmem:[%s2184_s7 + $0x30] sm:$0xff] }
 0x18d   :  { %675 = vmatmul.mubr.f32.gmra.mrb[4].mxu1 %v540_v29  ;;  %v524_v18 = vadd.f32 %v1870_v53, %v481_v61  ;;  %v527_v23 = vadd.f32 %v1875_v35, %v484_v8  ;;  %v526_v29 = vadd.f32 %v1870_v53, %v483_v7  ;;  %v485_v17 = vmul.f32 %v1858_v43, %v1735_v10 }
 0x18e   :  { %679 = vmatprep.mubr.f32.mxu1 %v543_v33  ;;  %v554_v13 = vmax.f32 %v522_v3, 0.0  ;;  %v557_v19 = vmax.f32 %v525_v9, 0.0  ;;  %v529_v20 = vadd.f32 %v1875_v35, %v486_v59  ;;  %v488_v5 = vmul.f32 %v1873_v54, %v1789_v37  ;;  %v893_v9 = vld [vmem:[%s2184_s7 + $0x48] sm:$0xff]  ;;  %v895_v59 = vld [vmem:[%s2184_s7 + $0x58] sm:$0xff] }
 0x18f   :  { %v556_v58 = vmax.f32 %v524_v18, 0.0  ;;  %v559_v32 = vmax.f32 %v527_v23, 0.0  ;;  %v558_v33 = vmax.f32 %v526_v29, 0.0  ;;  %v528_v34 = vadd.f32 %v1870_v53, %v485_v17  ;;  %v894_v23 = vld [vmem:[%s2184_s7 + $0x50] sm:$0xff] }
 0x190   :  { %v487_v27 = vmul.f32 %v1858_v43, %v1737_v15  ;;  %v561_v62 = vmax.f32 %v529_v20, 0.0  ;;  %v490_v10 = vmul.f32 %v1873_v54, %v1793_v30  ;;  %v489_v37 = vmul.f32 %v1858_v43, %v1739_v25 }
 0x191   :  { %680 = vmatmul.mubr.f32.gmra.mrb[6].mxu1 %v542_v36  ;;  %v531_v36 = vadd.f32 %v1875_v35, %v488_v5  ;;  %v560_v38 = vmax.f32 %v528_v34, 0.0  ;;  %v535_v30 = vadd.f32 %v1875_v35, %v1879_v12  ;;  %v534_v46 = vadd.f32 %v1870_v53, %v1862_v44  ;;  %v898_v5 = vld [vmem:[%s2184_s7 + $0x70] sm:$0xff] }
 0x192   :  { %684 = vmatprep.mubr.f32.mxu1 %v545_v39  ;;  %v530_v21 = vadd.f32 %v1870_v53, %v487_v27  ;;  %v533_v40 = vadd.f32 %v1875_v35, %v490_v10  ;;  %v532_v0 = vadd.f32 %v1870_v53, %v489_v37  ;;  %v885_v35 = vld [vmem:[%s2184_s7 + $0x8] sm:$0xff]  ;;  %v886_v53 = vld [vmem:[%s2184_s7 + $0x10] sm:$0xff]  ;;  %v1319_v42 = vpack.c.bf16 %v889_v26, %v888_v6 }
 0x193   :  { %v563_v39 = vmax.f32 %v531_v36, 0.0  ;;  %v567_v22 = vmax.f32 %v535_v30, 0.0  ;;  %v566_v25 = vmax.f32 %v534_v46, 0.0  ;;  %v1311_v2 = vpack.c.bf16 %v885_v35, %v884_v48 }
 0x194   :  { %v562_v15 = vmax.f32 %v530_v21, 0.0  ;;  %v564_v54 = vmax.f32 %v532_v0, 0.0  ;;  %v1331_v17 = vpack.c.bf16 %v895_v59, %v894_v23 }
 0x195   :  { %685 = vmatmul.mubr.f32.gmra.mrb[8].mxu1 %v544_v45  ;;  %v565_v45 = vmax.f32 %v533_v40, 0.0  ;;  %1312 = vmatprep.subr.bf16.mxu0 %v1311_v2 }
 0x196   :  { %689 = vmatprep.mubr.f32.mxu1 %v547_v47  ;;  %1343 = vmatprep.subr.bf16.mxu1 %v1311_v2 }
 0x197   :  { %1314 = vmatpush3.bf16.msra.mxu0 %v1311_v2  ;;  %1351 = vmatpush3.bf16.msra.mxu1 %v1311_v2 }
 0x199   :  { %690 = vmatmul.mubr.f32.gmra.mrb[10].mxu1 %v546_v50 }
 0x19a   :  { %694 = vmatprep.mubr.f32.mxu1 %v549_v52  ;;  %v1315_v52 = vpack.c.bf16 %v887_v55, %v886_v53 }
 0x19c   :  { %1316 = vmatprep.subr.bf16.mxu0 %v1315_v52  ;;  %1344 = vmatprep.subr.bf16.mxu1 %v1315_v52 }
 0x19d   :  { %695 = vmatmul.mubr.f32.gmra.mrb[12].mxu1 %v548_v1  ;;  %1318 = vmatpush3.bf16.msra.mxu0 %v1315_v52 }
 0x19e   :  { %699 = vmatprep.mubr.f32.mxu1 %v551_v11  ;;  %1352 = vmatpush3.bf16.msra.mxu1 %v1315_v52 }
 0x19f   :  { %1320 = vmatprep.subr.bf16.mxu0 %v1319_v42  ;;  %1345 = vmatprep.subr.bf16.mxu1 %v1319_v42 }
 0x1a1   :  { %700 = vmatmul.mubr.f32.gmra.mrb[14].mxu1 %v550_v63  ;;  %1322 = vmatpush3.bf16.msra.mxu0 %v1319_v42 }
 0x1a2   :  { %704 = vmatprep.mubr.f32.mxu1 %v553_v28  ;;  %v891_v28 = vld [vmem:[%s2184_s7 + $0x38] sm:$0xff]  ;;  %1353 = vmatpush3.bf16.msra.mxu1 %v1319_v42 }
 0x1a3   :  { %v1323_v49 = vpack.c.bf16 %v891_v28, %v890_v51 }
 0x1a5   :  { %705 = vmatmul.mubr.f32.gmra.mrb[16].mxu1 %v552_v16  ;;  %1324 = vmatprep.subr.bf16.mxu0 %v1323_v49 }
 0x1a6   :  { %709 = vmatprep.mubr.f32.mxu1 %v555_v57  ;;  %1346 = vmatprep.subr.bf16.mxu1 %v1323_v49  ;;  %v892_v57 = vld [vmem:[%s2184_s7 + $0x40] sm:$0xff] }
 0x1a7   :  { %1326 = vmatpush3.bf16.msra.mxu0 %v1323_v49  ;;  %1354 = vmatpush3.bf16.msra.mxu1 %v1323_v49 }
 0x1a9   :  { %710 = vmatmul.mubr.f32.gmra.mrb[18].mxu1 %v554_v13  ;;  %v1327_v13 = vpack.c.bf16 %v893_v9, %v892_v57 }
 0x1aa   :  { %714 = vmatprep.mubr.f32.mxu1 %v557_v19 }
 0x1ab   :  { %1328 = vmatprep.subr.bf16.mxu0 %v1327_v13  ;;  %1347 = vmatprep.subr.bf16.mxu1 %v1327_v13 }
 0x1ac   :  { %1330 = vmatpush3.bf16.msra.mxu0 %v1327_v13  ;;  %1355 = vmatpush3.bf16.msra.mxu1 %v1327_v13 }
 0x1ad   :  { %715 = vmatmul.mubr.f32.gmra.mrb[20].mxu1 %v556_v58  ;;  %v896_v58 = vld [vmem:[%s2184_s7 + $0x60] sm:$0xff]  ;;  %1332 = vmatprep.subr.bf16.mxu0 %v1331_v17 }
 0x1ae   :  { %719 = vmatprep.mubr.f32.mxu1 %v559_v32  ;;  %v897_v32 = vld [vmem:[%s2184_s7 + $0x68] sm:$0xff]  ;;  %1348 = vmatprep.subr.bf16.mxu1 %v1331_v17 }
 0x1af   :  { %v1335_v20 = vpack.c.bf16 %v897_v32, %v896_v58 }
 0x1b0   :  { %1334 = vmatpush3.bf16.msra.mxu0 %v1331_v17  ;;  %1356 = vmatpush3.bf16.msra.mxu1 %v1331_v17 }
 0x1b1   :  { %720 = vmatmul.mubr.f32.gmra.mrb[22].mxu1 %v558_v33  ;;  %v899_v33 = vld [vmem:[%s2184_s7 + $0x78] sm:$0xff]  ;;  %1336 = vmatprep.subr.bf16.mxu0 %v1335_v20 }
 0x1b2   :  { %724 = vmatprep.mubr.f32.mxu1 %v561_v62  ;;  %v1339_v10 = vpack.c.bf16 %v899_v33, %v898_v5  ;;  %1349 = vmatprep.subr.bf16.mxu1 %v1335_v20 }
 0x1b4   :  { %1338 = vmatpush3.bf16.msra.mxu0 %v1335_v20  ;;  %1357 = vmatpush3.bf16.msra.mxu1 %v1335_v20 }
 0x1b5   :  { %725 = vmatmul.mubr.f32.gmra.mrb[24].mxu1 %v560_v38  ;;  %1340 = vmatprep.subr.bf16.mxu0 %v1339_v10 }
 0x1b6   :  { %729 = vmatprep.mubr.f32.mxu1 %v563_v39  ;;  %1350 = vmatprep.subr.bf16.mxu1 %v1339_v10 }
 0x1b8   :  { %1342 = vmatpush3.bf16.msra.mxu0 %v1339_v10  ;;  %1358 = vmatpush3.bf16.msra.mxu1 %v1339_v10 }
 0x1b9   :  { %730 = vmatmul.mubr.f32.gmra.mrb[26].mxu1 %v562_v15 }
 0x1ba   :  { %734 = vmatprep.mubr.f32.mxu1 %v565_v45 }
 0x1bd   :  { %735 = vmatmul.mubr.f32.gmra.mrb[28].mxu1 %v564_v54 }
 0x1be   :  { %739 = vmatprep.mubr.f32.mxu1 %v567_v22 }
 0x1c1   :  { %740 = vmatmul.mubr.f32.gmra.mrb[30].mxu1 %v566_v25 }
 0x258   :  { %v1125_v43 = vpop.f32.mrb[0].mxu1 }
 0x259   :  { %v1126_v47 = vpop.f32.mrb[1].mxu1 }
 0x25a   :  { %v1979_v12 = vadd.f32 %v1126_v47, %v1125_v43 }
 0x25c   :  { %v1128_v50 = vpop.f32.mrb[2].mxu1 }
 0x25d   :  { %v1129_v44 = vpop.f32.mrb[3].mxu1 }
 0x25e   :  { %v1987_v24 = vadd.f32 %v1129_v44, %v1128_v50 }
 0x260   :  { %v747_v60 = vadd.f32 %v1987_v24, %v1979_v12  ;;  %v1131_v4 = vpop.f32.mrb[4].mxu1 }
 0x261   :  { %v1132_v1 = vpop.f32.mrb[5].mxu1 }
 0x262   :  { %v1997_v11 = vadd.f32 %v1132_v1, %v1131_v4 }
 0x264   :  { %v748_v41 = vadd.f32 %v1997_v11, %v747_v60  ;;  %v1134_v63 = vpop.f32.mrb[6].mxu1 }
 0x265   :  { %v1135_v56 = vpop.f32.mrb[7].mxu1 }
 0x266   :  { %v2006_v14 = vadd.f32 %v1135_v56, %v1134_v63 }
 0x268   :  { %v749_v16 = vadd.f32 %v2006_v14, %v748_v41  ;;  %v1137_v3 = vpop.f32.mrb[8].mxu1 }
 0x269   :  { %v1138_v61 = vpop.f32.mrb[9].mxu1 }
 0x26a   :  { %v2015_v8 = vadd.f32 %v1138_v61, %v1137_v3 }
 0x26c   :  { %v750_v18 = vadd.f32 %v2015_v8, %v749_v16  ;;  %v1140_v7 = vpop.f32.mrb[10].mxu1 }
 0x26d   :  { %v1141_v19 = vpop.f32.mrb[11].mxu1 }
 0x26e   :  { %v2027_v29 = vadd.f32 %v1141_v19, %v1140_v7 }
 0x270   :  { %v751_v34 = vadd.f32 %v2027_v29, %v750_v18  ;;  %v1143_v27 = vpop.f32.mrb[12].mxu1 }
 0x271   :  { %v1144_v62 = vpop.f32.mrb[13].mxu1 }
 0x272   :  { %v1145_v36 = vadd.f32 %v1144_v62, %v1143_v27 }
 0x274   :  { %v752_v38 = vadd.f32 %v1145_v36, %v751_v34  ;;  %v1146_v21 = vpop.f32.mrb[14].mxu1 }
 0x275   :  { %v1147_v37 = vpop.f32.mrb[15].mxu1 }
 0x276   :  { %v1148_v39 = vadd.f32 %v1147_v37, %v1146_v21 }
 0x278   :  { %v753_v40 = vadd.f32 %v1148_v39, %v752_v38  ;;  %v1149_v15 = vpop.f32.mrb[16].mxu1 }
 0x279   :  { %v1150_v0 = vpop.f32.mrb[17].mxu1 }
 0x27a   :  { %v1151_v45 = vadd.f32 %v1150_v0, %v1149_v15 }
 0x27c   :  { %v754_v30 = vadd.f32 %v1151_v45, %v753_v40  ;;  %v1152_v54 = vpop.f32.mrb[18].mxu1 }
 0x27d   :  { %v1153_v46 = vpop.f32.mrb[19].mxu1 }
 0x27e   :  { %v1154_v22 = vadd.f32 %v1153_v46, %v1152_v54 }
 0x280   :  { %v755_v25 = vadd.f32 %v1154_v22, %v754_v30  ;;  %v1155_v43 = vpop.f32.mrb[20].mxu1 }
 0x281   :  { %v1156_v47 = vpop.f32.mrb[21].mxu1 }
 0x282   :  { %v1157_v48 = vadd.f32 %v1156_v47, %v1155_v43 }
 0x284   :  { %v756_v35 = vadd.f32 %v1157_v48, %v755_v25  ;;  %v1158_v2 = vpop.f32.mrb[22].mxu1 }
 0x285   :  { %v1159_v50 = vpop.f32.mrb[23].mxu1 }
 0x286   :  { %v1160_v44 = vadd.f32 %v1159_v50, %v1158_v2 }
 0x288   :  { %v757_v53 = vadd.f32 %v1160_v44, %v756_v35  ;;  %v1161_v55 = vpop.f32.mrb[24].mxu1 }
 0x289   :  { %v1162_v52 = vpop.f32.mrb[25].mxu1 }
 0x28a   :  { %v1163_v60 = vadd.f32 %v1162_v52, %v1161_v55 }
 0x28c   :  { %v758_v4 = vadd.f32 %v1163_v60, %v757_v53  ;;  %v1164_v1 = vpop.f32.mrb[26].mxu1 }
 0x28d   :  { %v1165_v6 = vpop.f32.mrb[27].mxu1 }
 0x28e   :  { %v1166_v26 = vadd.f32 %v1165_v6, %v1164_v1 }
 0x290   :  { %v759_v42 = vadd.f32 %v1166_v26, %v758_v4  ;;  %v1167_v41 = vpop.f32.mrb[28].mxu1 }
 0x291   :  { %v1168_v63 = vpop.f32.mrb[29].mxu1 }
 0x292   :  { %v1169_v56 = vadd.f32 %v1168_v63, %v1167_v41 }
 0x294   :  { %v760_v51 = vadd.f32 %v1169_v56, %v759_v42  ;;  %v1170_v28 = vpop.f32.mrb[30].mxu1 }
 0x295   :  { %v1171_v49 = vpop.f32.mrb[31].mxu1 }
 0x296   :  { %v1172_v16 = vadd.f32 %v1171_v49, %v1170_v28 }
 0x298   :  { %v761_v3 = vadd.f32 %v1172_v16, %v760_v51 }
 0x29a   :  { %v762_v61 = vrot.slane %v761_v3, 4 }
 0x29c   :  { %v763_v57 = vadd.f32 %v762_v61, %v761_v3  ;;  %v745_v3 = vld [vmem:[%s2185_s5] sm:$0x1] }
 0x29e   :  { %v764_v9 = vrot.slane %v763_v57, 2 }
 0x2a0   :  { %v765_v13 = vadd.f32 %v764_v9, %v763_v57 }
 0x2a2   :  { %v766_v18 = vrot.slane %v765_v13, 1 }
 0x2a4   :  { %v767_v7 = vadd.f32 %v766_v18, %v765_v13  ;;  %v1091_v13 = vld [vmem:[%s2186_s6] ss:$0 sm:$0xff] }
 0x2a6   :  { %v768_v19 = vmul.f32 0.0078125, %v767_v7 }
 0x2a8   :  { %v2040_v23 = vsub.f32 %v1979_v12, %v768_v19  ;;  %v2043_v59 = vsub.f32 %v1987_v24, %v768_v19  ;;  %v2046_v58 = vsub.f32 %v1997_v11, %v768_v19  ;;  %v2049_v17 = vsub.f32 %v2006_v14, %v768_v19 }
 0x2a9   :  { %v2052_v32 = vsub.f32 %v2015_v8, %v768_v19  ;;  %v2055_v20 = vsub.f32 %v2027_v29, %v768_v19  ;;  %v2057_v5 = vsub.f32 %v1145_v36, %v768_v19  ;;  %v2059_v33 = vsub.f32 %v1148_v39, %v768_v19 }
 0x2aa   :  { %v2061_v12 = vsub.f32 %v1151_v45, %v768_v19  ;;  %v2063_v24 = vsub.f32 %v1154_v22, %v768_v19  ;;  %v2065_v34 = vsub.f32 %v1157_v48, %v768_v19  ;;  %v2067_v11 = vsub.f32 %v1160_v44, %v768_v19 }
 0x2ab   :  { %v781_v14 = vsub.f32 %v1163_v60, %v768_v19  ;;  %v782_v27 = vsub.f32 %v1166_v26, %v768_v19  ;;  %v783_v62 = vsub.f32 %v1169_v56, %v768_v19  ;;  %v784_v8 = vsub.f32 %v1172_v16, %v768_v19 }
 0x2ac   :  { %v785_v29 = vmul.f32 %v2040_v23, %v2040_v23  ;;  %v786_v36 = vmul.f32 %v2043_v59, %v2043_v59  ;;  %v787_v10 = vmul.f32 %v2046_v58, %v2046_v58  ;;  %v788_v21 = vmul.f32 %v2049_v17, %v2049_v17 }
 0x2ad   :  { %v789_v39 = vmul.f32 %v2052_v32, %v2052_v32  ;;  %v790_v15 = vmul.f32 %v2055_v20, %v2055_v20  ;;  %v791_v45 = vmul.f32 %v2057_v5, %v2057_v5  ;;  %v792_v54 = vmul.f32 %v2059_v33, %v2059_v33 }
 0x2ae   :  { %v801_v38 = vadd.f32 %v786_v36, %v785_v29  ;;  %v793_v22 = vmul.f32 %v2061_v12, %v2061_v12  ;;  %v794_v43 = vmul.f32 %v2063_v24, %v2063_v24  ;;  %v795_v48 = vmul.f32 %v2065_v34, %v2065_v34 }
 0x2af   :  { %v796_v2 = vmul.f32 %v2067_v11, %v2067_v11  ;;  %v797_v44 = vmul.f32 %v781_v14, %v781_v14  ;;  %v798_v55 = vmul.f32 %v782_v27, %v782_v27  ;;  %v799_v60 = vmul.f32 %v783_v62, %v783_v62 }
 0x2b0   :  { %v802_v37 = vadd.f32 %v801_v38, %v787_v10  ;;  %v800_v1 = vmul.f32 %v784_v8, %v784_v8 }
 0x2b2   :  { %v803_v40 = vadd.f32 %v802_v37, %v788_v21 }
 0x2b4   :  { %v804_v0 = vadd.f32 %v803_v40, %v789_v39 }
 0x2b6   :  { %v805_v30 = vadd.f32 %v804_v0, %v790_v15 }
 0x2b8   :  { %v806_v46 = vadd.f32 %v805_v30, %v791_v45 }
 0x2ba   :  { %v807_v25 = vadd.f32 %v806_v46, %v792_v54 }
 0x2bc   :  { %v808_v47 = vadd.f32 %v807_v25, %v793_v22 }
 0x2be   :  { %v809_v35 = vadd.f32 %v808_v47, %v794_v43 }
 0x2c0   :  { %v810_v50 = vadd.f32 %v809_v35, %v795_v48 }
 0x2c2   :  { %v811_v53 = vadd.f32 %v810_v50, %v796_v2 }
 0x2c4   :  { %v812_v52 = vadd.f32 %v811_v53, %v797_v44 }
 0x2c6   :  { %v813_v4 = vadd.f32 %v812_v52, %v798_v55 }
 0x2c8   :  { %v814_v6 = vadd.f32 %v813_v4, %v799_v60 }
 0x2ca   :  { %v815_v26 = vadd.f32 %v814_v6, %v800_v1  ;;  %v1092_v1 = vld [vmem:[%s2187_s8] ss:$0 sm:$0xff] }
 0x2cc   :  { %v816_v42 = vrot.slane %v815_v26, 4 }
 0x2ce   :  { %v817_v41 = vadd.f32 %v816_v42, %v815_v26 }
 0x2d0   :  { %v818_v63 = vrot.slane %v817_v41, 2 }
 0x2d2   :  { %v819_v56 = vadd.f32 %v818_v63, %v817_v41 }
 0x2d4   :  { %v820_v51 = vrot.slane %v819_v56, 1 }
 0x2d6   :  { %v821_v28 = vadd.f32 %v820_v51, %v819_v56 }
 0x2d8   :  { %v822_v49 = vmul.f32 0.0078125, %v821_v28 }
 0x2da   :  { %v823_v16 = vadd.f32 1e-05, %v822_v49 }
 0x2dc   :  { %1365 = vrsqrt.f32 %v823_v16 }
 0x2e6   :  { %v1366_v61 = vpop.eup %1365 }
 0x2e7   :  { %v825_v57 = vmul.f32 %v1366_v61, %v745_v3 }
 0x2e9   :  { %v829_v9 = vrot.slane %v825_v57, %v1851_v31 }
 0x2eb   :  { %v845_v18 = vmul.f32 %v829_v9, %v784_v8  ;;  %v830_v7 = vmul.f32 %v829_v9, %v2040_v23  ;;  %v842_v19 = vmul.f32 %v829_v9, %v781_v14  ;;  %v831_v29 = vmul.f32 %v829_v9, %v2043_v59 }
 0x2ec   :  { %v843_v36 = vmul.f32 %v829_v9, %v782_v27  ;;  %v832_v10 = vmul.f32 %v829_v9, %v2046_v58  ;;  %v844_v38 = vmul.f32 %v829_v9, %v783_v62  ;;  %v833_v21 = vmul.f32 %v829_v9, %v2049_v17 }
 0x2ed   :  { %v852_v37 = vadd.f32 %v1091_v13, %v830_v7  ;;  %v864_v39 = vadd.f32 %v1091_v13, %v842_v19  ;;  %v853_v40 = vadd.f32 %v1091_v13, %v831_v29  ;;  %v867_v46 = vadd.f32 %v1091_v13, %v845_v18 }
 0x2ee   :  { %v865_v31 = vadd.f32 %v1091_v13, %v843_v36  ;;  %v854_v15 = vadd.f32 %v1091_v13, %v832_v10  ;;  %v866_v0 = vadd.f32 %v1091_v13, %v844_v38  ;;  %v855_v14 = vadd.f32 %v1091_v13, %v833_v21 }
 0x2ef   :  { %v868_v45 = vmax.f32 %v852_v37, 0.0  ;;  %v880_v30 = vmax.f32 %v864_v39, 0.0  ;;  %v869_v8 = vmax.f32 %v853_v40, 0.0  ;;  %v834_v58 = vmul.f32 %v829_v9, %v2052_v32 }
 0x2f0   :  { %v881_v54 = vmax.f32 %v865_v31, 0.0  ;;  %v870_v23 = vmax.f32 %v854_v15, 0.0  ;;  %v882_v59 = vmax.f32 %v866_v0, 0.0  ;;  %v835_v17 = vmul.f32 %v829_v9, %v2055_v20 }
 0x2f1   :  { %1237 = vmatprep.mubr.f32.mxu0 %v868_v45  ;;  %1255 = vmatprep.mubr.f32.mxu1 %v880_v30  ;;  %v836_v27 = vmul.f32 %v829_v9, %v2057_v5  ;;  %v837_v62 = vmul.f32 %v829_v9, %v2059_v33  ;;  %v838_v22 = vmul.f32 %v829_v9, %v2061_v12  ;;  %v871_v47 = vmax.f32 %v855_v14, 0.0 }
 0x2f2   :  { %1238 = vmatmul.mubr.f32.vlgmr.msra.gmra.mrb[32].mxu0 %v869_v8  ;;  %1256 = vmatmul.mubr.f32.vlgmr.msra.gmra.mrb[32].mxu1 %v881_v54  ;;  %v839_v25 = vmul.f32 %v829_v9, %v2063_v24  ;;  %v856_v43 = vadd.f32 %v1091_v13, %v834_v58  ;;  %v883_v48 = vmax.f32 %v867_v46, 0.0  ;;  %v857_v35 = vadd.f32 %v1091_v13, %v835_v17 }
 0x2f3   :  { %1240 = vmatprep.mubr.f32.mxu0 %v870_v23  ;;  %1258 = vmatprep.mubr.f32.mxu1 %v882_v59  ;;  %v840_v32 = vmul.f32 %v829_v9, %v2065_v34  ;;  %v858_v20 = vadd.f32 %v1091_v13, %v836_v27  ;;  %v841_v5 = vmul.f32 %v829_v9, %v2067_v11 }
 0x2f4   :  { %v872_v2 = vmax.f32 %v856_v43, 0.0  ;;  %v873_v33 = vmax.f32 %v857_v35, 0.0  ;;  %v859_v50 = vadd.f32 %v1091_v13, %v837_v62  ;;  %v860_v44 = vadd.f32 %v1091_v13, %v838_v22 }
 0x2f5   :  { %v874_v12 = vmax.f32 %v858_v20, 0.0  ;;  %v861_v53 = vadd.f32 %v1091_v13, %v839_v25  ;;  %v862_v52 = vadd.f32 %v1091_v13, %v840_v32  ;;  %v863_v60 = vadd.f32 %v1091_v13, %v841_v5 }
 0x2f6   :  { %1241 = vmatmul.mubr.f32.gmra.mrb[34].mxu0 %v871_v47  ;;  %1259 = vmatmul.mubr.f32.gmra.mrb[34].mxu1 %v883_v48  ;;  %v875_v24 = vmax.f32 %v859_v50, 0.0  ;;  %v876_v55 = vmax.f32 %v860_v44, 0.0 }
 0x2f7   :  { %1243 = vmatprep.mubr.f32.mxu0 %v872_v2  ;;  %v877_v34 = vmax.f32 %v861_v53, 0.0  ;;  %v878_v4 = vmax.f32 %v862_v52, 0.0  ;;  %v879_v11 = vmax.f32 %v863_v60, 0.0 }
 0x2fa   :  { %1244 = vmatmul.mubr.f32.gmra.mrb[36].mxu0 %v873_v33 }
 0x2fb   :  { %1246 = vmatprep.mubr.f32.mxu0 %v874_v12 }
 0x2fe   :  { %1247 = vmatmul.mubr.f32.gmra.mrb[38].mxu0 %v875_v24 }
 0x2ff   :  { %1249 = vmatprep.mubr.f32.mxu0 %v876_v55 }
 0x302   :  { %1250 = vmatmul.mubr.f32.gmra.mrb[40].mxu0 %v877_v34 }
 0x303   :  { %1252 = vmatprep.mubr.f32.mxu0 %v878_v4 }
 0x306   :  { %1253 = vmatmul.mubr.f32.gmra.mrb[42].mxu0 %v879_v11 }
 0x3c5   :  { %v1239_v6 = vpop.f32.mrb[32].mxu0  ;;  %v1257_v26 = vpop.f32.mrb[32].mxu1 }
 0x3c6   :  { %v979_v42 = vadd.f32 %v1239_v6, %v1092_v1  ;;  %v1039_v41 = vadd.f32 %v1257_v26, %v1092_v1  ;;  %v973_v63 = vpop.f32.mrb[33].mxu0  ;;  %v1033_v56 = vpop.f32.mrb[33].mxu1 }
 0x3c7   :  { %v974_v51 = vadd.f32 %v1092_v1, %v973_v63  ;;  %v1034_v28 = vadd.f32 %v1092_v1, %v1033_v56 }
 0x3c8   :  { %1054 = vst.msk [vmem:[%s2188_s9 + $0x8] sm:$0xff] %vm1052_vm4, %v979_v42  ;;  %1066 = vst.msk [vmem:[%s2188_s9 + $0x68] sm:$0xff] %vm1052_vm4, %v1039_v41 }
 0x3c9   :  { %1053 = vst.msk [vmem:[%s2188_s9] sm:$0xff] %vm1052_vm4, %v974_v51  ;;  %1065 = vst.msk [vmem:[%s2188_s9 + $0x60] sm:$0xff] %vm1052_vm4, %v1034_v28  ;;  %v1242_v49 = vpop.f32.mrb[34].mxu0  ;;  %v1260_v16 = vpop.f32.mrb[34].mxu1 }
 0x3ca   :  { %v989_v3 = vadd.f32 %v1242_v49, %v1092_v1  ;;  %v1049_v61 = vadd.f32 %v1260_v16, %v1092_v1  ;;  %v983_v57 = vpop.f32.mrb[35].mxu0  ;;  %v1043_v9 = vpop.f32.mrb[35].mxu1 }
 0x3cb   :  { %v984_v13 = vadd.f32 %v1092_v1, %v983_v57  ;;  %v1044_v18 = vadd.f32 %v1092_v1, %v1043_v9 }
 0x3cc   :  { %1056 = vst.msk [vmem:[%s2188_s9 + $0x18] sm:$0xff] %vm1052_vm4, %v989_v3  ;;  %1068 = vst.msk [vmem:[%s2188_s9 + $0x78] sm:$0xff] %vm1052_vm4, %v1049_v61 }
 0x3cd   :  { %1055 = vst.msk [vmem:[%s2188_s9 + $0x10] sm:$0xff] %vm1052_vm4, %v984_v13  ;;  %1067 = vst.msk [vmem:[%s2188_s9 + $0x70] sm:$0xff] %vm1052_vm4, %v1044_v18  ;;  %v1245_v7 = vpop.f32.mrb[36].mxu0 }
 0x3ce   :  { %v999_v19 = vadd.f32 %v1245_v7, %v1092_v1  ;;  %v993_v29 = vpop.f32.mrb[37].mxu0 }
 0x3cf   :  { %v994_v36 = vadd.f32 %v1092_v1, %v993_v29 }
 0x3d0   :  { %1058 = vst.msk [vmem:[%s2188_s9 + $0x28] sm:$0xff] %vm1052_vm4, %v999_v19 }
 0x3d1   :  { %1057 = vst.msk [vmem:[%s2188_s9 + $0x20] sm:$0xff] %vm1052_vm4, %v994_v36  ;;  %v1248_v10 = vpop.f32.mrb[38].mxu0 }
 0x3d2   :  { %v1009_v38 = vadd.f32 %v1248_v10, %v1092_v1  ;;  %v1003_v21 = vpop.f32.mrb[39].mxu0 }
 0x3d3   :  { %v1004_v37 = vadd.f32 %v1092_v1, %v1003_v21 }
 0x3d4   :  { %1060 = vst.msk [vmem:[%s2188_s9 + $0x38] sm:$0xff] %vm1052_vm4, %v1009_v38 }
 0x3d5   :  { %1059 = vst.msk [vmem:[%s2188_s9 + $0x30] sm:$0xff] %vm1052_vm4, %v1004_v37  ;;  %v1251_v39 = vpop.f32.mrb[40].mxu0 }
 0x3d6   :  { %v1019_v40 = vadd.f32 %v1251_v39, %v1092_v1  ;;  %v1013_v31 = vpop.f32.mrb[41].mxu0 }
 0x3d7   :  { %v1014_v15 = vadd.f32 %v1092_v1, %v1013_v31 }
 0x3d8   :  { %1062 = vst.msk [vmem:[%s2188_s9 + $0x48] sm:$0xff] %vm1052_vm4, %v1019_v40 }
 0x3d9   :  { %1061 = vst.msk [vmem:[%s2188_s9 + $0x40] sm:$0xff] %vm1052_vm4, %v1014_v15  ;;  %v1254_v0 = vpop.f32.mrb[42].mxu0 }
 0x3da   :  { %v1029_v45 = vadd.f32 %v1254_v0, %v1092_v1  ;;  %v1023_v30 = vpop.f32.mrb[43].mxu0 }
 0x3db   :  { %v1024_v8 = vadd.f32 %v1092_v1, %v1023_v30 }
 0x3dc   :  { %1064 = vst.msk [vmem:[%s2188_s9 + $0x58] sm:$0xff] %vm1052_vm4, %v1029_v45 }
 0x3dd   :  { %1063 = vst.msk [vmem:[%s2188_s9 + $0x50] sm:$0xff] %vm1052_vm4, %v1024_v8 }

</bundles_post_ra>
